<compile_context>
chip_gen: v5e
topology: v5e:2x2
jax: 0.10.0
libtpu: 0.0.40
codegen_flags: <defaults>
</compile_context>

<pallas_src>
import functools

import jax
import jax.numpy as jnp
from jax.experimental import pallas as pl
from jax.experimental.pallas import tpu as pltpu

_LANE = 128
_MAX_TILE = 65536        # (4, 65536) f32 input tile = 1 MiB per grid step
_MIN_SPLIT_TILE = 16384  # split a single-tile batch in two only if each half >= 256 KiB
_PALLAS_MIN_BATCH = 4096  # below this, a fused XLA dot beats a pallas_call dispatch


def _controller_kernel(w_ref, b_ref, x_ref, o_ref):
    # w_ref: (4,)    f32 SMEM  -- weight row of the single output unit
    # b_ref: (1,)    f32 SMEM  -- bias
    # x_ref: (4, TB) f32 VMEM  -- transposed batch tile (features on sublanes,
    #                             batch on lanes -> lane-dense)
    # o_ref: (1, TB)     VMEM  -- lane-dense output tile
    x = x_ref[...].astype(jnp.float32)          # (4, TB)
    y = (x[0:1, :] * w_ref[0]
         + x[1:2, :] * w_ref[1]
         + x[2:3, :] * w_ref[2]
         + x[3:4, :] * w_ref[3]
         + b_ref[0])                            # pure VPU scalar-broadcast FMA chain
    o_ref[...] = y.astype(o_ref.dtype)


def _round_up(a, m):
    return (a + m - 1) // m * m


@functools.partial(jax.jit, static_argnames=("tb", "b_pad"))
def _pallas_linear(state, weight, bias, *, tb, b_pad):
    """Pallas path.  tb / b_pad are static Python ints (tb a multiple of 128)."""
    B, D = state.shape
    grid = b_pad // tb

    # Layout plumbing (transpose + zero-pad the batch axis) fused by XLA with
    # the pallas_call inside this single jit -> one copy, not an extra HBM pass.
    x_t = jnp.zeros((D, b_pad), dtype=state.dtype).at[:, :B].set(state.T)

    out_t = pl.pallas_call(
        _controller_kernel,
        out_shape=jax.ShapeDtypeStruct((1, b_pad), state.dtype),
        grid=(grid,),
        in_specs=[
            pl.BlockSpec(memory_space=pltpu.MemorySpace.SMEM),   # weight (4,)
            pl.BlockSpec(memory_space=pltpu.MemorySpace.SMEM),   # bias   (1,)
            pl.BlockSpec((D, tb), lambda i: (0, i)),             # x_t tile
        ],
        out_specs=pl.BlockSpec((1, tb), lambda i: (0, i)),
        compiler_params=pltpu.CompilerParams(
            dimension_semantics=("parallel",)),
    )(weight.reshape(D), bias, x_t)

    # Back to PyTorch's (batch, u_size) convention.  Padded columns (== bias)
    # are sliced off here; this output-side slice/transpose is only 4 B/row.
    return out_t[:, :B].T


@jax.jit
def _xla_linear(state, weight, bias):
    # Small-batch / fused path: let XLA emit the 4 FMAs directly.
    return state @ weight.T + bias


def controller_forward(state, weight, bias, *, max_tile=_MAX_TILE, force_pallas=False):
    """Pallas equivalent of Controller.forward.

    state:  (B, 4) float32
    weight: (1, 4) float32
    bias:   (1,)   float32
    returns (B, 1) float32
    """
    B, D = state.shape
    assert D == 4
    assert weight.shape == (1, D)
    assert bias.shape == (1,)

    if (not force_pallas) and B < _PALLAS_MIN_BATCH:
        # Dispatch-bound regime: a single fused XLA dot is strictly faster
        # than a pallas_call here.
        return _xla_linear(state, weight, bias)

    b_pad128 = _round_up(B, _LANE)
    if b_pad128 > max_tile:
        tb = max_tile                                   # stream over the grid
    elif b_pad128 >= 2 * _MIN_SPLIT_TILE:
        # Whole batch fits in one tile but is big: split in two grid steps so
        # the "parallel" axis shards across both v7x TensorCores.
        tb = _round_up(-(-b_pad128 // 2), _LANE)
    else:
        tb = b_pad128                                   # single tile
    b_pad = _round_up(B, tb)

    return _pallas_linear(state, weight, bias, tb=tb, b_pad=b_pad)


def reference_forward(state, weight, bias):
    # Pure-JAX reference (mirrors torch nn.Linear semantics).
    return state @ weight.T + bias


if __name__ == "__main__":
    key = jax.random.PRNGKey(0)
    kb, kx = jax.random.split(key)

    # Weight is hard-coded in the PyTorch module; bias uses nn.Linear's default
    # init bound, drawn deterministically from PRNGKey(0).
    weight = jnp.array([[-0.0652, -0.2577, -1.308, -0.6947]], dtype=jnp.float32)  # (1, 4)
    bound = 1.0 / (4.0 ** 0.5)
    bias = jax.random.uniform(kb, (1,), minval=-bound, maxval=bound, dtype=jnp.float32)

    # Example input: batch of 8 cartpole states (4-dim each).
    state = jax.random.normal(kx, (8, 4), dtype=jnp.float32)
    y_ref = reference_forward(state, weight, bias)

    # 1) Force the Pallas kernel (the real small-batch path would bypass it).
    y_pallas = jax.block_until_ready(
        controller_forward(state, weight, bias, force_pallas=True))
    assert y_pallas.shape == (8, 1)
    assert jnp.allclose(y_pallas, y_ref, atol=1e-5, rtol=1e-5), (y_pallas, y_ref)

    # 2) Default small-batch bypass path (fused XLA dot) must agree too.
    y_xla = jax.block_until_ready(controller_forward(state, weight, bias))
    assert y_xla.shape == (8, 1)
    assert jnp.allclose(y_xla, y_ref, atol=1e-5, rtol=1e-5), (y_xla, y_ref)

    print("KERNEL_OK")
</pallas_src>

<mosaic_0001>
module attributes {stable_mosaic.version = 11 : i64} {
  func.func @_controller_kernel(%arg0: i32, %arg1: memref<4xf32, #tpu.memory_space<smem>>, %arg2: memref<1xf32, #tpu.memory_space<smem>>, %arg3: memref<4x128xf32, #tpu.memory_space<vmem>>, %arg4: memref<1x128xf32, #tpu.memory_space<vmem>>) attributes {dimension_semantics = [#tpu.dimension_semantics<parallel>], iteration_bounds = array<i64: 1>, scalar_prefetch = 0 : i64, scratch_operands = 0 : i64, tpu.core_type = #tpu.core_type<tc>, window_params = [{transform_indices = @transform_0, window_bounds = array<i64: 4>}, {transform_indices = @transform_1, window_bounds = array<i64: 1>}, {transform_indices = @transform_2, window_bounds = array<i64: 4, 128>}, {transform_indices = @transform_3, window_bounds = array<i64: 1, 128>}]} {
    %c0 = arith.constant 0 : index
    %c0_0 = arith.constant 0 : index
    %0 = vector.load %arg3[%c0, %c0_0] : memref<4x128xf32, #tpu.memory_space<vmem>>, vector<4x128xf32>
    %1 = vector.extract_strided_slice %0 {offsets = [0, 0], sizes = [1, 128], strides = [1, 1]} : vector<4x128xf32> to vector<1x128xf32>
    %c0_1 = arith.constant 0 : index
    %2 = memref.load %arg1[%c0_1] : memref<4xf32, #tpu.memory_space<smem>>
    %3 = vector.broadcast %2 : f32 to vector<1x128xf32>
    %4 = arith.mulf %1, %3 : vector<1x128xf32>
    %5 = vector.extract_strided_slice %0 {offsets = [1, 0], sizes = [1, 128], strides = [1, 1]} : vector<4x128xf32> to vector<1x128xf32>
    %c1 = arith.constant 1 : index
    %6 = memref.load %arg1[%c1] : memref<4xf32, #tpu.memory_space<smem>>
    %7 = vector.broadcast %6 : f32 to vector<1x128xf32>
    %8 = arith.mulf %5, %7 : vector<1x128xf32>
    %9 = arith.addf %4, %8 : vector<1x128xf32>
    %10 = vector.extract_strided_slice %0 {offsets = [2, 0], sizes = [1, 128], strides = [1, 1]} : vector<4x128xf32> to vector<1x128xf32>
    %c2 = arith.constant 2 : index
    %11 = memref.load %arg1[%c2] : memref<4xf32, #tpu.memory_space<smem>>
    %12 = vector.broadcast %11 : f32 to vector<1x128xf32>
    %13 = arith.mulf %10, %12 : vector<1x128xf32>
    %14 = arith.addf %9, %13 : vector<1x128xf32>
    %15 = vector.extract_strided_slice %0 {offsets = [3, 0], sizes = [1, 128], strides = [1, 1]} : vector<4x128xf32> to vector<1x128xf32>
    %c3 = arith.constant 3 : index
    %16 = memref.load %arg1[%c3] : memref<4xf32, #tpu.memory_space<smem>>
    %17 = vector.broadcast %16 : f32 to vector<1x128xf32>
    %18 = arith.mulf %15, %17 : vector<1x128xf32>
    %19 = arith.addf %14, %18 : vector<1x128xf32>
    %c0_2 = arith.constant 0 : index
    %20 = memref.load %arg2[%c0_2] : memref<1xf32, #tpu.memory_space<smem>>
    %21 = vector.broadcast %20 : f32 to vector<1x128xf32>
    %22 = arith.addf %19, %21 : vector<1x128xf32>
    %c0_3 = arith.constant 0 : index
    %c0_4 = arith.constant 0 : index
    %23 = vector.load %arg4[%c0_3, %c0_4] : memref<1x128xf32, #tpu.memory_space<vmem>>, vector<1x128xf32>
    tpu.vector_store %arg4[%c0_3, %c0_4], %22 {strides = array<i32>} : memref<1x128xf32, #tpu.memory_space<vmem>>, vector<1x128xf32>,
    return
  }
  func.func @transform_0(%arg0: i32) -> i32 {
    %c0_i32 = arith.constant 0 : i32
    %c0_i32_0 = arith.constant 0 : i32
    return %c0_i32 : i32
  }
  func.func @transform_1(%arg0: i32) -> i32 {
    %c0_i32 = arith.constant 0 : i32
    %c0_i32_0 = arith.constant 0 : i32
    return %c0_i32 : i32
  }
  func.func @transform_2(%arg0: i32) -> (i32, i32) {
    %c0_i32 = arith.constant 0 : i32
    %c0_i32_0 = arith.constant 0 : i32
    return %c0_i32, %arg0 : i32, i32
  }
  func.func @transform_3(%arg0: i32) -> (i32, i32) {
    %c0_i32 = arith.constant 0 : i32
    %c0_i32_0 = arith.constant 0 : i32
    return %c0_i32, %arg0 : i32, i32
  }
}

</mosaic_0001>

<bundles_post_ra>
// kernel: _pallas_linear.1
= control target key start
LH: loop header
LB: loop body
LE: loop exit
PB: predicated region body
PF: predicated region fallthrough
CT: control target
= control target key end

     0   :  { %9 = vsyncpa [#allocation4], 0  ;;  %s80_s15 = smov [#allocation3]   ;;  %s113_s0 = inlined_call_operand.vmem [shape: f32[4], index: 0, kind: input, shape index: {}]   ;;  %s114_s1 = inlined_call_operand.<no memory space> [shape: f32[1], index: 1, kind: input, shape index: {}]   ;;  %s115_s2 = inlined_call_operand.vmem [shape: f32[4,128], index: 2, kind: input, shape index: {}]   ;;  %s116_s3 = inlined_call_operand.vmem [shape: f32[1,128], index: 3, kind: output, shape index: {}]  }
   0x1   :  { %s15_s14 = sshll.u32 %s113_s0, 4  ;;  %s16_s14 = int_to_ptr.vmem [resolvable:$true] %s15_s14 }
   0x2   :  { %18 = dma.vmem_to_smem %s16_s14, 16, %s80_s15, [#allocation4]  }
   0x3   :  { %78 = dma.done.wait [#allocation4], 16  }
   0x4   :  { %79 = vsyncadd [#allocation4], 4294967280 }
   0x5   :  { %27 = sfence }
   0x6   :  { %s29_s16 = sld [smem:[#allocation3]]  ;;  %v28_v0 = vld [vmem:[%s115_s2] sm:$0xf]  ;;  %v54_v14 = vstv %s114_s1 }
   0x7   :  { %s62_s17 = sld [smem:[#allocation3 + $0x1]] }
   0x8   :  { %s63_s18 = sld [smem:[#allocation3 + $0x2]] }
   0x9   :  { %s64_s19 = sld [smem:[#allocation3 + $0x3]] }
   0xc   :  { %v30_v1 = vstv %s29_s16 }
   0xd   :  { %v33_v2 = vstv %s62_s17  ;;  %v31_v3 = vmul.f32 %v30_v1, %v28_v0 }
   0xe   :  { %v34_v4 = vmul.f32 %v33_v2, %v28_v0  ;;  %v40_v5 = vstv %s63_s18 }
   0xf   :  { %v41_v6 = vmul.f32 %v40_v5, %v28_v0  ;;  %v47_v7 = vstv %s64_s19 }
  0x10   :  { %v36_v8 = vrot.slane %v34_v4, 1  ;;  %v48_v9 = vmul.f32 %v47_v7, %v28_v0 }
  0x11   :  { %v43_v10 = vrot.slane %v41_v6, 2 }
  0x12   :  { %v38_v11 = vadd.f32 %v36_v8, %v31_v3  ;;  %v50_v12 = vrot.slane %v48_v9, 3 }
  0x14   :  { %v45_v13 = vadd.f32 %v43_v10, %v38_v11 }
  0x16   :  { %v52_v15 = vadd.f32 %v50_v12, %v45_v13 }
  0x18   :  { %v55_v16 = vadd.f32 %v54_v14, %v52_v15 }
  0x1a   :  { %56 = vst [vmem:[%s116_s3] sm:$0x1] %v55_v16 }
  0x1b   :  { %61 = vsyncpa [#allocation4], 1 }

</bundles_post_ra>
